<compile_context>
chip_gen: v5e
topology: v5e:2x2
jax: 0.10.0
libtpu: 0.0.40
codegen_flags: <defaults>
</compile_context>

<pallas_src>
import jax
import jax.numpy as jnp
from jax import lax
from jax.experimental import pallas as pl
from jax.experimental.pallas import tpu as pltpu


def _make_kernel(H, W, C, BN):
    HW = H * W
    # tap order t = kh*3 + kw, spatial offset (dh, dw) = (kh-1, kw-1)
    # roll shift so rolled[p] = x_flat[p + dh*W + dw]  (mod HW; masked anyway)
    shifts = tuple((-((kh - 1) * W + (kw - 1))) % HW
                   for kh in range(3) for kw in range(3))

    def kernel(x_ref, w0_ref, b0_ref, w1_ref, b1_ref, m_ref, o_ref):
        mask = m_ref[...]                     # (9*C, HW) 0/1 boundary mask
        w0 = w0_ref[...]                      # (C, 9C)  packed weights
        b0 = b0_ref[...]                      # (C, 1)
        w1 = w1_ref[...]
        b1 = b1_ref[...]

        def conv3x3(inp, w, b):
            # im2col: 9 lane rotations of the (C, HW) slab -> (9*C, HW)
            parts = [inp if s == 0 else pltpu.roll(inp, shift=s, axis=1)
                     for s in shifts]
            patches = jnp.concatenate(parts, axis=0) * mask     # (9C, HW)
            patches = patches.astype(w.dtype)                   # optional bf16
            out = jnp.dot(w, patches,                           # one MXU push
                          preferred_element_type=jnp.float32)   # (Cout, HW)
            return out + b                                      # +(Cout, 1)

        # Static (unrolled) loop over the BN images in this batch chunk.
        for b_img in range(BN):
            x = x_ref[b_img]                  # (C, HW) f32, spatial on lanes
            h = jnp.maximum(x, 0.0)           # relu (VPU, f32)
            h = conv3x3(h, w0, b0)
            h = jnp.maximum(h, 0.0)           # relu
            h = conv3x3(h, w1, b1)
            o_ref[b_img] = (h + x).astype(o_ref.dtype)  # residual + lane-dense store

    return kernel


def _pick_batch_block(N):
    """Largest divisor of N that keeps >=2 grid steps (megacore) and <=8 imgs/step."""
    if N < 2:
        return 1
    cap = max(1, min(8, N // 2))
    bn = 1
    for d in range(1, cap + 1):
        if N % d == 0:
            bn = d
    return bn


def residual_block(x_nchw, w0, b0, w1, b1, *,
                   matmul_dtype=jnp.float32, batch_block=None):
    """x_nchw: (N, C, H, W);  w*: (3, 3, Cin, Cout) HWIO;  b*: (Cout,)."""
    N, C, H, W = x_nchw.shape
    assert w0.shape == (3, 3, C, C) and w1.shape == (3, 3, C, C) and \
        b0.shape == (C,) and b1.shape == (C,), \
        "Residual_Block requires Cin == Cout == channels"
    HW = H * W

    BN = _pick_batch_block(N) if batch_block is None else batch_block
    assert N % BN == 0, "batch_block must divide N"

    # Free reshape (contiguous), no transpose: spatial goes onto the lane axis.
    x_flat = x_nchw.reshape(N, C, HW).astype(jnp.float32)

    # Pack HWIO (3,3,Cin,Cout) -> (Cout, 9*Cin); column index = (kh*3+kw)*Cin+ci
    # which matches the in-kernel patch concat order.
    def pack_w(w):
        return jnp.transpose(w, (3, 0, 1, 2)).reshape(C, 9 * C).astype(matmul_dtype)

    w0p, w1p = pack_w(w0), pack_w(w1)
    b0c = b0.reshape(C, 1).astype(jnp.float32)
    b1c = b1.reshape(C, 1).astype(jnp.float32)

    # 0/1 validity mask per tap (implements the padding=1 zero border),
    # pre-expanded to the (9*Cin, HW) patch layout -> single elementwise
    # multiply in-kernel, no sublane-broadcast slicing.
    hh = jnp.arange(H)
    ww = jnp.arange(W)
    rows = []
    for kh in range(3):
        for kw in range(3):
            dh, dw = kh - 1, kw - 1
            vh = (hh + dh >= 0) & (hh + dh < H)            # (H,)
            vw = (ww + dw >= 0) & (ww + dw < W)            # (W,)
            rows.append((vh[:, None] & vw[None, :]).reshape(HW))
    mask = jnp.stack(rows, axis=0).astype(jnp.float32)     # (9, HW)
    mask_big = jnp.repeat(mask, C, axis=0)                 # (9*C, HW)

    kernel = _make_kernel(H, W, C, BN)
    out = pl.pallas_call(
        kernel,
        out_shape=jax.ShapeDtypeStruct((N, C, HW), jnp.float32),
        grid=(N // BN,),
        in_specs=[
            pl.BlockSpec((BN, C, HW), lambda n: (n, 0, 0)),     # activations
            pl.BlockSpec((C, 9 * C), lambda n: (0, 0)),         # packed w0
            pl.BlockSpec((C, 1), lambda n: (0, 0)),             # b0
            pl.BlockSpec((C, 9 * C), lambda n: (0, 0)),         # packed w1
            pl.BlockSpec((C, 1), lambda n: (0, 0)),             # b1
            pl.BlockSpec((9 * C, HW), lambda n: (0, 0)),        # tap mask
        ],
        out_specs=pl.BlockSpec((BN, C, HW), lambda n: (n, 0, 0)),
        compiler_params=pltpu.CompilerParams(
            dimension_semantics=("parallel",),
            vmem_limit_bytes=32 * 1024 * 1024),
    )(x_flat, w0p, b0c, w1p, b1c, mask_big)

    return out.reshape(N, C, H, W)                              # free reshape


def _reference(x_nchw, w0, b0, w1, b1):
    """Pure-JAX reference matching PyTorch Residual_Block.forward."""
    def conv(h, w, b):
        y = lax.conv_general_dilated(
            h, w, window_strides=(1, 1), padding="SAME",
            dimension_numbers=("NCHW", "HWIO", "NCHW"))
        return y + b[None, :, None, None]
    h = jax.nn.relu(x_nchw)
    h = conv(h, w0, b0)
    h = jax.nn.relu(h)
    h = conv(h, w1, b1)
    return h + x_nchw


if __name__ == "__main__":
    N, C, H, W = 2, 4, 16, 16
    key = jax.random.PRNGKey(0)
    kx, k0, kb0, k1, kb1 = jax.random.split(key, 5)

    x = jax.random.normal(kx, (N, C, H, W), dtype=jnp.float32)

    # Deterministic init mimicking PyTorch Conv2d default: U(-1/sqrt(fan_in), +)
    fan_in = C * 3 * 3
    bound = 1.0 / (fan_in ** 0.5)
    w0 = jax.random.uniform(k0, (3, 3, C, C), jnp.float32, -bound, bound)
    b0 = jax.random.uniform(kb0, (C,), jnp.float32, -bound, bound)
    w1 = jax.random.uniform(k1, (3, 3, C, C), jnp.float32, -bound, bound)
    b1 = jax.random.uniform(kb1, (C,), jnp.float32, -bound, bound)

    out = residual_block(x, w0, b0, w1, b1)   # f32 operands -> exact 1e-4 match
    out = jax.block_until_ready(out)

    ref = _reference(x, w0, b0, w1, b1)
    assert out.shape == (N, C, H, W)
    assert jnp.allclose(out, ref, atol=1e-4, rtol=1e-4), "mismatch vs reference"
    print("KERNEL_OK")
</pallas_src>

<mosaic_0001>
module attributes {stable_mosaic.version = 11 : i64} {
  func.func @kernel(%arg0: i32, %arg1: memref<1x4x256xf32, #tpu.memory_space<vmem>>, %arg2: memref<4x36xf32, #tpu.memory_space<vmem>>, %arg3: memref<4x1xf32, #tpu.memory_space<vmem>>, %arg4: memref<4x36xf32, #tpu.memory_space<vmem>>, %arg5: memref<4x1xf32, #tpu.memory_space<vmem>>, %arg6: memref<36x256xf32, #tpu.memory_space<vmem>>, %arg7: memref<1x4x256xf32, #tpu.memory_space<vmem>>) attributes {dimension_semantics = [#tpu.dimension_semantics<parallel>], iteration_bounds = array<i64: 2>, scalar_prefetch = 0 : i64, scratch_operands = 0 : i64, tpu.core_type = #tpu.core_type<tc>, window_params = [{transform_indices = @transform_0, window_bounds = array<i64: 1, 4, 256>}, {pipeline_mode = #tpu.pipeline_mode<synchronous>, transform_indices = @transform_1, window_bounds = array<i64: 4, 36>}, {pipeline_mode = #tpu.pipeline_mode<synchronous>, transform_indices = @transform_2, window_bounds = array<i64: 4, 1>}, {pipeline_mode = #tpu.pipeline_mode<synchronous>, transform_indices = @transform_3, window_bounds = array<i64: 4, 36>}, {pipeline_mode = #tpu.pipeline_mode<synchronous>, transform_indices = @transform_4, window_bounds = array<i64: 4, 1>}, {pipeline_mode = #tpu.pipeline_mode<synchronous>, transform_indices = @transform_5, window_bounds = array<i64: 36, 256>}, {transform_indices = @transform_6, window_bounds = array<i64: 1, 4, 256>}]} {
    %c0 = arith.constant 0 : index
    %c0_0 = arith.constant 0 : index
    %0 = vector.load %arg6[%c0, %c0_0] : memref<36x256xf32, #tpu.memory_space<vmem>>, vector<36x256xf32>
    %c0_1 = arith.constant 0 : index
    %c0_2 = arith.constant 0 : index
    %1 = vector.load %arg2[%c0_1, %c0_2] : memref<4x36xf32, #tpu.memory_space<vmem>>, vector<4x36xf32>
    %c0_3 = arith.constant 0 : index
    %c0_4 = arith.constant 0 : index
    %2 = vector.load %arg3[%c0_3, %c0_4] : memref<4x1xf32, #tpu.memory_space<vmem>>, vector<4x1xf32>
    %c0_5 = arith.constant 0 : index
    %c0_6 = arith.constant 0 : index
    %3 = vector.load %arg4[%c0_5, %c0_6] : memref<4x36xf32, #tpu.memory_space<vmem>>, vector<4x36xf32>
    %c0_7 = arith.constant 0 : index
    %c0_8 = arith.constant 0 : index
    %4 = vector.load %arg5[%c0_7, %c0_8] : memref<4x1xf32, #tpu.memory_space<vmem>>, vector<4x1xf32>
    %c0_9 = arith.constant 0 : index
    %c0_10 = arith.constant 0 : index
    %c0_11 = arith.constant 0 : index
    %5 = vector.load %arg1[%c0_9, %c0_10, %c0_11] : memref<1x4x256xf32, #tpu.memory_space<vmem>>, vector<1x4x256xf32>
    %6 = vector.shape_cast %5 : vector<1x4x256xf32> to vector<4x256xf32>
    %cst = arith.constant 0.000000e+00 : f32
    %7 = vector.broadcast %cst : f32 to vector<4x256xf32>
    %8 = arith.maximumf %6, %7 : vector<4x256xf32>
    %c17_i32 = arith.constant 17 : i32
    %9 = tpu.dynamic_rotate %8 by %c17_i32 dim 1 : vector<4x256xf32>, i32 -> vector<4x256xf32>
    %c16_i32 = arith.constant 16 : i32
    %10 = tpu.dynamic_rotate %8 by %c16_i32 dim 1 : vector<4x256xf32>, i32 -> vector<4x256xf32>
    %c15_i32 = arith.constant 15 : i32
    %11 = tpu.dynamic_rotate %8 by %c15_i32 dim 1 : vector<4x256xf32>, i32 -> vector<4x256xf32>
    %c1_i32 = arith.constant 1 : i32
    %12 = tpu.dynamic_rotate %8 by %c1_i32 dim 1 : vector<4x256xf32>, i32 -> vector<4x256xf32>
    %c255_i32 = arith.constant 255 : i32
    %13 = tpu.dynamic_rotate %8 by %c255_i32 dim 1 : vector<4x256xf32>, i32 -> vector<4x256xf32>
    %c241_i32 = arith.constant 241 : i32
    %14 = tpu.dynamic_rotate %8 by %c241_i32 dim 1 : vector<4x256xf32>, i32 -> vector<4x256xf32>
    %c240_i32 = arith.constant 240 : i32
    %15 = tpu.dynamic_rotate %8 by %c240_i32 dim 1 : vector<4x256xf32>, i32 -> vector<4x256xf32>
    %c239_i32 = arith.constant 239 : i32
    %16 = tpu.dynamic_rotate %8 by %c239_i32 dim 1 : vector<4x256xf32>, i32 -> vector<4x256xf32>
    %17 = tpu.concatenate %9, %10, %11, %12, %8, %13, %14, %15, %16 in 0 : vector<4x256xf32>, vector<4x256xf32>, vector<4x256xf32>, vector<4x256xf32>, vector<4x256xf32>, vector<4x256xf32>, vector<4x256xf32>, vector<4x256xf32>, vector<4x256xf32> -> vector<36x256xf32>
    %18 = arith.mulf %17, %0 : vector<36x256xf32>
    %cst_12 = arith.constant dense<0.000000e+00> : vector<4x256xf32>
    %19 = tpu.matmul %1, %18, %cst_12 {dimension_numbers = #tpu.dot_dimension_numbers<[1], [0], [0], [1], [0, 0, 1, 1], [], []>} : vector<4x36xf32>, vector<36x256xf32>, vector<4x256xf32> -> vector<4x256xf32>
    %20 = vector.broadcast %2 : vector<4x1xf32> to vector<4x256xf32>
    %21 = arith.addf %19, %20 : vector<4x256xf32>
    %cst_13 = arith.constant 0.000000e+00 : f32
    %22 = vector.broadcast %cst_13 : f32 to vector<4x256xf32>
    %23 = arith.maximumf %21, %22 : vector<4x256xf32>
    %c17_i32_14 = arith.constant 17 : i32
    %24 = tpu.dynamic_rotate %23 by %c17_i32_14 dim 1 : vector<4x256xf32>, i32 -> vector<4x256xf32>
    %c16_i32_15 = arith.constant 16 : i32
    %25 = tpu.dynamic_rotate %23 by %c16_i32_15 dim 1 : vector<4x256xf32>, i32 -> vector<4x256xf32>
    %c15_i32_16 = arith.constant 15 : i32
    %26 = tpu.dynamic_rotate %23 by %c15_i32_16 dim 1 : vector<4x256xf32>, i32 -> vector<4x256xf32>
    %c1_i32_17 = arith.constant 1 : i32
    %27 = tpu.dynamic_rotate %23 by %c1_i32_17 dim 1 : vector<4x256xf32>, i32 -> vector<4x256xf32>
    %c255_i32_18 = arith.constant 255 : i32
    %28 = tpu.dynamic_rotate %23 by %c255_i32_18 dim 1 : vector<4x256xf32>, i32 -> vector<4x256xf32>
    %c241_i32_19 = arith.constant 241 : i32
    %29 = tpu.dynamic_rotate %23 by %c241_i32_19 dim 1 : vector<4x256xf32>, i32 -> vector<4x256xf32>
    %c240_i32_20 = arith.constant 240 : i32
    %30 = tpu.dynamic_rotate %23 by %c240_i32_20 dim 1 : vector<4x256xf32>, i32 -> vector<4x256xf32>
    %c239_i32_21 = arith.constant 239 : i32
    %31 = tpu.dynamic_rotate %23 by %c239_i32_21 dim 1 : vector<4x256xf32>, i32 -> vector<4x256xf32>
    %32 = tpu.concatenate %24, %25, %26, %27, %23, %28, %29, %30, %31 in 0 : vector<4x256xf32>, vector<4x256xf32>, vector<4x256xf32>, vector<4x256xf32>, vector<4x256xf32>, vector<4x256xf32>, vector<4x256xf32>, vector<4x256xf32>, vector<4x256xf32> -> vector<36x256xf32>
    %33 = arith.mulf %32, %0 : vector<36x256xf32>
    %cst_22 = arith.constant dense<0.000000e+00> : vector<4x256xf32>
    %34 = tpu.matmul %3, %33, %cst_22 {dimension_numbers = #tpu.dot_dimension_numbers<[1], [0], [0], [1], [0, 0, 1, 1], [], []>} : vector<4x36xf32>, vector<36x256xf32>, vector<4x256xf32> -> vector<4x256xf32>
    %35 = vector.broadcast %4 : vector<4x1xf32> to vector<4x256xf32>
    %36 = arith.addf %34, %35 : vector<4x256xf32>
    %37 = arith.addf %36, %6 : vector<4x256xf32>
    %c0_23 = arith.constant 0 : index
    %c0_24 = arith.constant 0 : index
    %c0_25 = arith.constant 0 : index
    %38 = vector.load %arg7[%c0_23, %c0_24, %c0_25] : memref<1x4x256xf32, #tpu.memory_space<vmem>>, vector<1x4x256xf32>
    %39 = vector.shape_cast %38 : vector<1x4x256xf32> to vector<4x256xf32>
    %40 = vector.shape_cast %37 : vector<4x256xf32> to vector<1x4x256xf32>
    tpu.vector_store %arg7[%c0_23, %c0_24, %c0_25], %40 {strides = array<i32>} : memref<1x4x256xf32, #tpu.memory_space<vmem>>, vector<1x4x256xf32>,
    return
  }
  func.func @transform_0(%arg0: i32) -> (i32, i32, i32) {
    %c0_i32 = arith.constant 0 : i32
    %c0_i32_0 = arith.constant 0 : i32
    %c0_i32_1 = arith.constant 0 : i32
    return %arg0, %c0_i32, %c0_i32_0 : i32, i32, i32
  }
  func.func @transform_1(%arg0: i32) -> (i32, i32) {
    %c0_i32 = arith.constant 0 : i32
    %c0_i32_0 = arith.constant 0 : i32
    %c0_i32_1 = arith.constant 0 : i32
    return %c0_i32, %c0_i32_0 : i32, i32
  }
  func.func @transform_2(%arg0: i32) -> (i32, i32) {
    %c0_i32 = arith.constant 0 : i32
    %c0_i32_0 = arith.constant 0 : i32
    %c0_i32_1 = arith.constant 0 : i32
    return %c0_i32, %c0_i32_0 : i32, i32
  }
  func.func @transform_3(%arg0: i32) -> (i32, i32) {
    %c0_i32 = arith.constant 0 : i32
    %c0_i32_0 = arith.constant 0 : i32
    %c0_i32_1 = arith.constant 0 : i32
    return %c0_i32, %c0_i32_0 : i32, i32
  }
  func.func @transform_4(%arg0: i32) -> (i32, i32) {
    %c0_i32 = arith.constant 0 : i32
    %c0_i32_0 = arith.constant 0 : i32
    %c0_i32_1 = arith.constant 0 : i32
    return %c0_i32, %c0_i32_0 : i32, i32
  }
  func.func @transform_5(%arg0: i32) -> (i32, i32) {
    %c0_i32 = arith.constant 0 : i32
    %c0_i32_0 = arith.constant 0 : i32
    %c0_i32_1 = arith.constant 0 : i32
    return %c0_i32, %c0_i32_0 : i32, i32
  }
  func.func @transform_6(%arg0: i32) -> (i32, i32, i32) {
    %c0_i32 = arith.constant 0 : i32
    %c0_i32_0 = arith.constant 0 : i32
    %c0_i32_1 = arith.constant 0 : i32
    return %arg0, %c0_i32, %c0_i32_0 : i32, i32, i32
  }
}

</mosaic_0001>

<bundles_post_ra>
// kernel: tpu_custom_call.1
= control target key start
LH: loop header
LB: loop body
LE: loop exit
PB: predicated region body
PF: predicated region fallthrough
CT: control target
= control target key end

     0   :  { %11 = vsyncpa [#allocation3], 0  ;;  %s1364_s0 = inlined_call_operand.hbm [shape: f32[2,4,256], index: 0, kind: input, shape index: {}]   ;;  %s1365_s1 = inlined_call_operand.vmem [shape: f32[4,36], index: 1, kind: input, shape index: {}]   ;;  %s1366_s2 = inlined_call_operand.vmem [shape: f32[4,1], index: 2, kind: input, shape index: {}]   ;;  %s1367_s3 = inlined_call_operand.vmem [shape: f32[4,36], index: 3, kind: input, shape index: {}]   ;;  %s1368_s4 = inlined_call_operand.vmem [shape: f32[4,1], index: 4, kind: input, shape index: {}]   ;;  %s1369_s5 = inlined_call_operand.hbm [shape: f32[36,256], index: 5, kind: input, shape index: {}]   ;;  %s1370_s6 = inlined_call_operand.hbm [shape: f32[2,4,256], index: 6, kind: output, shape index: {}]  }
   0x1   :  { %13 = vsyncpa [#allocation3 + $0x1], 0 }
   0x2   :  { %14 = vsyncpa [#allocation6], 0 }
   0x3   :  { %15 = vsyncpa [#allocation4], 0 }
   0x4   :  { %17 = vsyncpa [#allocation4 + $0x1], 0  ;;  %s1037_s21 = smov 0   ;;  %s1039_s22 = smov 0  }
   0x5   :  { %s1041_s23 = smov 0   ;;  %s1043_s24 = smov 0  }
   0x6 LB: > { %s208_s27 = sshll.u32 %s1369_s5, 4  ;;  %s1061_s28 = sadd.s32 4294967295, %s988_s24   ;;  %s988_s24 = sphi %s1043_s24, %s1380_s24   ;;  %s984_s23 = sphi %s1041_s23, %s1379_s23   ;;  %s980_s22 = sphi %s1039_s22, %s1378_s22   ;;  %s976_s21 = sphi %s1037_s21, %s1377_s21   ;;  %s209_s27 = int_to_ptr.hbm [resolvable:$true] %s208_s27 }
   0x7   : > { %p763_p0 = scmp.ge.s32.totalorder %s988_s24, 1  ;;  %p44_p1 = scmp.eq.s32.totalorder %s1061_s28, 0 }
   0x8   : > { %p185_p2 = scmp.lt.s32.totalorder %s988_s24, 3  ;;  %s990_s30 = smov [#allocation5]  }
   0x9   : > { %s210_s7 = sshll.u32 %s990_s30, 4  ;;  %s991_s8 = smov 256   ;;  %s211_s7 = int_to_ptr.vmem [resolvable:$true] %s210_s7 }
   0xa   : > { %p1066_p3 = pnand %p763_p0, %p185_p2  ;;  %s992_s9 = smov 16  }
   0xb   : > { %s762_s10 = sadd.s32 4294967294, %s988_s24   ;;  %s1077_s11 = sadd.s32 1, %s988_s24  }
   0xc   : > { %p796_p4 = pneg %p1066_p3  ;;  %s30_s12 = sadd.s32 1, %s984_s23 }
   0xd   : > { %s27_s13 = ssub.s32 %s988_s24, %s1077_s11  ;;  %p37_p7 = scmp.ne.s32.totalorder %s984_s23, %s980_s22 }
   0xe   : > { %p797_p6 = pnand %p796_p4, %p44_p1  ;;  %p28_p8 = scmp.eq.s32.totalorder %s27_s13, 0 }
   0xf   : > { %p38_p9 = scmp.eq.s32.totalorder %s988_s24, 0  ;;  %p43_p10 = scmp.ne.s32.totalorder %s980_s22, %s976_s21 }
  0x10   : > { %799 = dma.hbm_to_vmem [thread:$0]  (!%p797_p6), %s209_s27, 1280, %s211_s7, [#allocation6], %s991_s8, %s991_s8, %s992_s9  }
  0x11   : > { %p172_p11 = scmp.eq.s32.totalorder %s1061_s28, 1  ;;  %p1093_p12 = por %p44_p1, %p43_p10 }
  0x12   : > { %s1089_s14 = scalar_select %p28_p8, %s984_s23, %s30_s12  }
  0x13   : > { %p1097_p13 = por %p172_p11, %p37_p7  ;;  %p178_p0 = scmp.eq.s32.totalorder %s762_s10, 1 }
  0x14   : > { %p39_p2 = por %p38_p9, %p37_p7  ;;  %s224_s17 = sand.u32 1, %s984_s23  }
  0x15   : > { %p1102_p4 = por %p178_p0, %p43_p10  ;;  %p809_p6 = scmp.lt.s32.totalorder %s988_s24, 2 }
  0x16   : > { %s766_s19 = sshll.u32 %s224_s17, 3  ;;  %s786_s20 = sshll.u32 %s988_s24, 3 }
  0x17   : > { %s233_s27 = scalar_lea.hbm %s1364_s0, %s786_s20  ;;  %s228_s7 = scalar_lea.vmem [#allocation2], %s766_s19 }
  0x18   : > { %s235_s30 = sshll.u32 %s233_s27, 4  ;;  %s237_s8 = sshll.u32 %s228_s7, 4  ;;  %s236_s30 = int_to_ptr.hbm [resolvable:$true] %s235_s30  ;;  %s238_s8 = int_to_ptr.vmem [resolvable:$true] %s237_s8 }
  0x19   : > { %p1111_p8 = pnand %p809_p6, %p39_p2  ;;  %s225_s10 = scalar_lea.sflag [#allocation3], %s224_s17 }
  0x1a   : > { %s888_s12 = sshra.s32 %s236_s30, 4  ;;  %s895_s19 = scalar_lea.hbm %s1364_s0, 16  ;;  %s889_s12 = int_to_ptr.hbm [resolvable:$true] %s888_s12 }
  0x1b   : > { %s890_s13 = scalar_lea.hbm %s889_s12, 8  ;;  %p892_p9 = pneg %p1111_p8 }
  0x1c   : > { %p891_p7 = scmp.ne.s32.totalorder %s889_s12, %s890_s13  ;;  %p896_p0 = scmp.lt.s32.totalorder %s889_s12, %s1364_s0 }
  0x1d   : > { %p897_p2 = scmp.lt.s32.totalorder %s895_s19, %s890_s13 }
  0x1e   : > { %p893_p10 = pnand %p892_p9, %p891_p7 }
  0x1f   : > { %p898_p6 = por %p897_p2, %p896_p0 }
  0x20   : > { %p894_p11 = pneg %p893_p10 }
  0x22   : > { %p899_p5 = pnand %p898_p6, %p894_p11 }
  0x24   : > { %902 = shalt.err (!%p899_p5)
}
  0x25   : > { %803 = dma.hbm_to_vmem [thread:$0]  (!%p1111_p8), %s236_s30, 128, %s238_s8, %s225_s10  }
  0x26   : > { %246 = sbr.rel (%p1066_p3) target bundleno = 677 (0x2a5), region = 44  ;;  %s1128_s17 = sand.u32 (!%p1066_p3), 1, %s980_s22  }
  0x27   : > { %s770_s7 = sshll.u32 (!%p1066_p3), %s1128_s17, 3  ;;  %s249_s20 = scalar_lea.sflag (!%p1066_p3), [#allocation3], %s1128_s17 }
  0x28   : > { %s252_s12 = scalar_lea.vmem (!%p1066_p3), [#allocation2], %s770_s7 }
  0x2b   : > { %963 = dma.done.wait (%p1093_p12), %s249_s20, 128  }
  0x2c   : > { %965 = vsyncadd (%p1093_p12), %s249_s20, 4294967168 }
  0x2d   : > { %967 = dma.done.wait (%p44_p1), [#allocation6], 1280  }
  0x2e   : > { %969 = vsyncadd (%p44_p1), [#allocation6], 4294966016  ;;  %v301_v0 = vld [vmem:[%s252_s12] sm:$0xff]  ;;  %s993_s29 = smov 16   ;;  %s994_s15 = smov 15   ;;  %v313_v30 = vlaneseq  ;;  %v1001_v31 = vmov 0  }
  0x2f   : > { %v302_v1 = vmax.f32 %v301_v0, 0.0  ;;  %s995_s30 = smov 1   ;;  %s996_s8 = smov 127   ;;  %v298_v29 = vld [vmem:[%s1366_s2] sm:$0xf]  ;;  %856 = vset.pattern.permute.xlu1 %v1001_v31  ;;  %857 = vset.pattern.permute.xlu0 %v1001_v31  ;;  %vm431_vm4 = vcmask 1043456  }
  0x30   : > { %s997_s9 = smov 113   ;;  %s998_s10 = smov 112   ;;  %v1163_v32 = vand.u32 127, %v313_v30  ;;  %v1177_v44 = vld [vmem:[#allocation5 + $0x40] sm:$0xf]  ;;  %v1189_v51 = vld [vmem:[#allocation5 + $0x30] sm:$0xff] }
  0x31   : > { %304 = vst [vmem:[#allocation1] ss:$2 sm:$0xff] %v302_v1  ;;  %s999_s13 = smov 17   ;;  %s1000_s25 = smov 111   ;;  %v1179_v45 = vld [vmem:[#allocation5 + $0x48] sm:$0xf] }
  0x32   : > { %vm387_vm0 = vcmp.lt.s32.totalorder %v1163_v32, 112  ;;  %vm363_vm1 = vcmp.lt.s32.totalorder %v1163_v32, 127  ;;  %vm375_vm2 = vcmp.lt.s32.totalorder %v1163_v32, 113  ;;  %vm399_vm3 = vcmp.lt.s32.totalorder %v1163_v32, 111  ;;  %v1192_v53 = vld [vmem:[#allocation5 + $0x38] sm:$0xff]  ;;  %v1199_v57 = vld [vmem:[#allocation5 + $0x20] sm:$0xff] }
  0x33   : > { %vm327_vm5 = vcmp.lt.s32.totalorder %v1163_v32, 16  ;;  %vm351_vm6 = vcmp.lt.s32.totalorder %v1163_v32, 1  ;;  %v1202_v59 = vld [vmem:[#allocation5 + $0x28] sm:$0xff]  ;;  %vm315_vm7 = vcmp.lt.s32.totalorder %v1163_v32, 17  ;;  %vm339_vm8 = vcmp.lt.s32.totalorder %v1163_v32, 15 }
  0x34   : > { %vm455_vm9 = vcmask 293888  }
  0x38   : > { %v305_v2 = vld.sshfl [vmem:[#allocation1] sm:$0xff pattern:$0x75316420]  ;;  %v306_v3 = vld.sshfl [vmem:[#allocation1 + $0x8] sm:$0xff pattern:$0x75316420] }
  0x39   : > { %318 = vst [vmem:[#allocation1] ss:$2 sm:$0xff] %v302_v1 }
  0x40   : > { %v319_v4 = vld.sshfl [vmem:[#allocation1] sm:$0xff pattern:$0x75316420]  ;;  %v320_v5 = vld.sshfl [vmem:[#allocation1 + $0x8] sm:$0xff pattern:$0x75316420] }
  0x41   : > { %330 = vst [vmem:[#allocation1] ss:$2 sm:$0xff] %v302_v1  ;;  %323 = vrot.lane.b32.xlu1 %v319_v4, %s993_s29  ;;  %325 = vrot.lane.b32.xlu2 %v320_v5, %s993_s29 }
  0x48   : > { %v331_v6 = vld.sshfl [vmem:[#allocation1] sm:$0xff pattern:$0x75316420]  ;;  %v332_v7 = vld.sshfl [vmem:[#allocation1 + $0x8] sm:$0xff pattern:$0x75316420] }
  0x49   : > { %335 = vrot.lane.b32.xlu0 %v331_v6, %s994_s15  ;;  %342 = vst [vmem:[#allocation1] ss:$2 sm:$0xff] %v302_v1 }
  0x50   : > { %v343_v8 = vld.sshfl [vmem:[#allocation1] sm:$0xff pattern:$0x75316420]  ;;  %v344_v9 = vld.sshfl [vmem:[#allocation1 + $0x8] sm:$0xff pattern:$0x75316420] }
  0x51   : > { %349 = vrot.lane.b32.xlu0 %v344_v9, %s995_s30  ;;  %354 = vst [vmem:[#allocation1] ss:$2 sm:$0xff] %v302_v1  ;;  %347 = vrot.lane.b32.xlu2 %v343_v8, %s995_s30 }
  0x58   : > { %v355_v10 = vld.sshfl [vmem:[#allocation1] sm:$0xff pattern:$0x75316420]  ;;  %v356_v11 = vld.sshfl [vmem:[#allocation1 + $0x8] sm:$0xff pattern:$0x75316420] }
  0x59   : > { %366 = vst [vmem:[#allocation1] ss:$2 sm:$0xff] %v302_v1  ;;  %359 = vrot.lane.b32.xlu2 %v355_v10, %s996_s8 }
  0x60   : > { %v367_v12 = vld.sshfl [vmem:[#allocation1] sm:$0xff pattern:$0x75316420]  ;;  %v368_v13 = vld.sshfl [vmem:[#allocation1 + $0x8] sm:$0xff pattern:$0x75316420] }
  0x61   : > { %371 = vrot.lane.b32.xlu0 %v367_v12, %s997_s9  ;;  %373 = vrot.lane.b32.xlu1 %v368_v13, %s997_s9  ;;  %378 = vst [vmem:[#allocation1] ss:$2 sm:$0xff] %v302_v1 }
  0x62   : > { %361 = vrot.lane.b32.xlu2 %v356_v11, %s996_s8 }
  0x68   : > { %v379_v14 = vld.sshfl [vmem:[#allocation1] sm:$0xff pattern:$0x75316420]  ;;  %v380_v15 = vld.sshfl [vmem:[#allocation1 + $0x8] sm:$0xff pattern:$0x75316420] }
  0x69   : > { %383 = vrot.lane.b32.xlu0 %v379_v14, %s998_s10  ;;  %390 = vst [vmem:[#allocation1] ss:$2 sm:$0xff] %v302_v1  ;;  %v1225_v14 = vld [vmem:[#allocation5 + $0x10] sm:$0xff] }
  0x6a   : > { %309 = vrot.lane.b32.xlu2 %v305_v2, %s999_s13 }
  0x70   : > { %v391_v16 = vld.sshfl [vmem:[#allocation1] sm:$0xff pattern:$0x75316420]  ;;  %v392_v17 = vld.sshfl [vmem:[#allocation1 + $0x8] sm:$0xff pattern:$0x75316420] }
  0x71   : > { %385 = vrot.lane.b32.xlu0 %v380_v15, %s998_s10  ;;  %395 = vrot.lane.b32.xlu1 %v391_v16, %s1000_s25  ;;  %414 = vst [vmem:[#allocation1] ss:$2 sm:$0xff] %v302_v1  ;;  %v1227_v15 = vld [vmem:[#allocation5 + $0x18] sm:$0xff] }
  0x78   : > { %v415_v20 = vld.sshfl [vmem:[#allocation1] sm:$0xff pattern:$0x75316420]  ;;  %v416_v21 = vld.sshfl [vmem:[#allocation1 + $0x8] sm:$0xff pattern:$0x75316420] }
  0x79   : > { %311 = vrot.lane.b32.xlu0 %v306_v3, %s999_s13  ;;  %397 = vrot.lane.b32.xlu1 %v392_v17, %s1000_s25  ;;  %652 = vst [vmem:[#allocation1] ss:$2 sm:$0xff] %v301_v0 }
  0x81   : > { %337 = vrot.lane.b32.xlu1 %v332_v7, %s994_s15 }
  0x89   : > { %452 = vperm.xlu1 %856, %v298_v29  }
  0x9b   : > { %v326_v19 = vpop.permute.xlu2 %325 }
  0xab   : > { %v348_v24 = vpop.permute.xlu2 %347 }
  0xb3   : > { %v324_v23 = vpop.permute.xlu1 %323  ;;  %v360_v27 = vpop.permute.xlu2 %359 }
  0xb4   : > { %v328_v1 = vsel %vm327_vm5, %v324_v23, %v326_v19  ;;  %v329_v2 = vsel %vm327_vm5, %v326_v19, %v324_v23  ;;  %v1240_v23 = vld [vmem:[#allocation5 + $0x8] sm:$0xff] }
  0xb5   : > { %v404_v9 = vrot.slane %v329_v2, 4  ;;  %v405_v10 = vrot.slane %v328_v1, 4 }
  0xbb   : > { %v1158_v18 = vpop.permute.xlu0 %335 }
  0xbc   : > { %v362_v35 = vpop.permute.xlu2 %361 }
  0xbd   : > { %v364_v38 = vsel %vm363_vm1, %v360_v27, %v362_v35  ;;  %v365_v39 = vsel %vm363_vm1, %v362_v35, %v360_v27 }
  0xbe   : > { %v421_v42 = vrot.slane %v364_v38, 4  ;;  %v422_v43 = vrot.slane %v365_v39, 4 }
  0xc0   : > { %v436_v58 = vsel %vm431_vm4, %v415_v20, %v421_v42  ;;  %v437_v60 = vsel %vm431_vm4, %v416_v21, %v422_v43  ;;  %v1237_v21 = vld [vmem:[#allocation5] sm:$0xff] }
  0xc1   : > { %v444_v5 = vmul.f32 %v436_v58, %v1199_v57  ;;  %v445_v6 = vmul.f32 %v437_v60, %v1202_v59 }
  0xc3   : > { %v350_v22 = vpop.permute.xlu0 %349 }
  0xc4   : > { %v310_v61 = vpop.permute.xlu2 %309  ;;  %v352_v3 = vsel %vm351_vm6, %v348_v24, %v350_v22  ;;  %v353_v4 = vsel %vm351_vm6, %v350_v22, %v348_v24 }
  0xc5   : > { %v410_v11 = vrot.slane %v353_v4, 4  ;;  %v411_v12 = vrot.slane %v352_v3, 4 }
  0xd3   : > { %v372_v25 = vpop.permute.xlu0 %371  ;;  %v374_v26 = vpop.permute.xlu1 %373 }
  0xd4   : > { %v376_v46 = vsel %vm375_vm2, %v372_v25, %v374_v26  ;;  %v377_v47 = vsel %vm375_vm2, %v374_v26, %v372_v25 }
  0xdb   : > { %v384_v28 = vpop.permute.xlu0 %383 }
  0xe3   : > { %v386_v33 = vpop.permute.xlu0 %385  ;;  %v396_v34 = vpop.permute.xlu1 %395 }
  0xe4   : > { %v388_v36 = vsel %vm387_vm0, %v384_v28, %v386_v33  ;;  %v389_v37 = vsel %vm387_vm0, %v386_v33, %v384_v28  ;;  %v297_v28 = vld [vmem:[%s1365_s1] sm:$0xf] }
  0xe5   : > { %v427_v40 = vrot.slane %v388_v36, 4  ;;  %v428_v41 = vrot.slane %v389_v37, 4 }
  0xe7   : > { %v438_v52 = vsel %vm431_vm4, %v376_v46, %v427_v40  ;;  %v439_v54 = vsel %vm431_vm4, %v377_v47, %v428_v41 }
  0xe8   : > { %v446_v63 = vmul.f32 %v438_v52, %v1189_v51  ;;  %v447_v0 = vmul.f32 %v439_v54, %v1192_v53 }
  0xeb   : > { %v398_v48 = vpop.permute.xlu1 %397  ;;  %v312_v62 = vpop.permute.xlu0 %311 }
  0xec   : > { %v400_v49 = vsel %vm399_vm3, %v396_v34, %v398_v48  ;;  %v401_v50 = vsel %vm399_vm3, %v398_v48, %v396_v34  ;;  %v316_v7 = vsel %vm315_vm7, %v310_v61, %v312_v62  ;;  %v317_v8 = vsel %vm315_vm7, %v312_v62, %v310_v61 }
  0xed   : > { %v448_v55 = vmul.f32 %v400_v49, %v1177_v44  ;;  %v449_v56 = vmul.f32 %v401_v50, %v1179_v45  ;;  %v432_v22 = vsel %vm431_vm4, %v317_v8, %v404_v9  ;;  %v433_v24 = vsel %vm431_vm4, %v316_v7, %v405_v10  ;;  %v300_v50 = vld [vmem:[%s1368_s4] sm:$0xf] }
  0xee   : > { %v441_v27 = vmul.f32 %v433_v24, %v1240_v23 }
  0xef   : > { %773 = vmatpush.msk.msra.mxu0 %vm431_vm4, %v448_v55  ;;  %775 = vmatpush.msk.msra.mxu1 %vm431_vm4, %v449_v56 }
  0xf1   : > { %477 = vmatpush.msra.mxu0 %v446_v63  ;;  %497 = vmatpush.msra.mxu1 %v447_v0 }
  0xf3   : > { %v338_v13 = vpop.permute.xlu1 %337  ;;  %478 = vmatpush.msra.mxu0 %v444_v5  ;;  %498 = vmatpush.msra.mxu1 %v445_v6 }
  0xf4   : > { %v340_v16 = vsel %vm339_vm8, %v1158_v18, %v338_v13  ;;  %v341_v17 = vsel %vm339_vm8, %v338_v13, %v1158_v18  ;;  %v440_v18 = vmul.f32 %v432_v22, %v1237_v21 }
  0xf5   : > { %v434_v19 = vsel %vm431_vm4, %v341_v17, %v410_v11  ;;  %v435_v20 = vsel %vm431_vm4, %v340_v16, %v411_v12 }
  0xf6   : > { %v442_v25 = vmul.f32 %v434_v19, %v1225_v14  ;;  %v443_v26 = vmul.f32 %v435_v20, %v1227_v15 }
  0xf8   : > { %479 = vmatpush.msra.mxu0 %v442_v25  ;;  %499 = vmatpush.msra.mxu1 %v443_v26 }
  0xfa   : > { %480 = vmatpush.msra.mxu0 %v440_v18  ;;  %500 = vmatpush.msra.mxu1 %v441_v27 }
  0xfb   : > { %774 = vmatmul.msk.f32.vlgmr.msra.gmra.mxu0 %vm455_vm9, %v297_v28  ;;  %776 = vmatmul.msk.f32.vlgmr.msra.gmra.mxu1 %vm455_vm9, %v297_v28  ;;  %v453_v29 = vpop.permute.xlu1 %452 }
 0x178   : > { %v482_v30 = vpop.f32.mrf.mxu0  ;;  %v502_v31 = vpop.f32.mrf.mxu1 }
 0x179   : > { %v483_v33 = vadd.f32 %v482_v30, %v453_v29  ;;  %v503_v34 = vadd.f32 %v502_v31, %v453_v29 }
 0x17b   : > { %v505_v35 = vmax.f32 %v483_v33, 0.0  ;;  %v506_v36 = vmax.f32 %v503_v34, 0.0 }
 0x17d   : > { %545 = vrot.lane.b32.xlu0 %v506_v36, %s998_s10  ;;  %549 = vrot.lane.b32.xlu1 %v505_v35, %s1000_s25 }
 0x17e   : > { %543 = vrot.lane.b32.xlu2 %v505_v35, %s998_s10 }
 0x185   : > { %531 = vrot.lane.b32.xlu0 %v505_v35, %s996_s8  ;;  %533 = vrot.lane.b32.xlu1 %v506_v36, %s996_s8  ;;  %s787_s8 = sshll.u32 %s1061_s28, 3  ;;  %s666_s28 = scalar_lea.sflag [#allocation4], %s1128_s17 }
 0x186   : > { %551 = vrot.lane.b32.xlu2 %v506_v36, %s1000_s25  ;;  %s286_s25 = scalar_lea.vmem [#allocation7], %s770_s7  ;;  %s938_s7 = scalar_lea.hbm %s1370_s6, 16 }
 0x187   : > { %s679_s19 = sshll.u32 %s286_s25, 4  ;;  %s680_s19 = int_to_ptr.vmem [resolvable:$true] %s679_s19 }
 0x18d   : > { %539 = vrot.lane.b32.xlu0 %v506_v36, %s997_s9  ;;  %525 = vrot.lane.b32.xlu1 %v505_v35, %s995_s30 }
 0x18e   : > { %537 = vrot.lane.b32.xlu2 %v505_v35, %s997_s9 }
 0x195   : > { %513 = vrot.lane.b32.xlu0 %v505_v35, %s993_s29  ;;  %515 = vrot.lane.b32.xlu1 %v506_v36, %s993_s29 }
 0x196   : > { %527 = vrot.lane.b32.xlu2 %v506_v36, %s995_s30 }
 0x19d   : > { %521 = vrot.lane.b32.xlu0 %v506_v36, %s994_s15  ;;  %507 = vrot.lane.b32.xlu1 %v505_v35, %s999_s13 }
 0x19e   : > { %519 = vrot.lane.b32.xlu2 %v505_v35, %s994_s15 }
 0x1a5   : > { %599 = vperm.xlu0 %857, %v300_v50  }
 0x1a6   : > { %509 = vrot.lane.b32.xlu2 %v506_v36, %s999_s13  ;;  %s677_s13 = scalar_lea.hbm %s1370_s6, %s787_s8 }
 0x1a7   : > { %s681_s26 = sshll.u32 %s677_s13, 4  ;;  %s682_s26 = int_to_ptr.hbm [resolvable:$true] %s681_s26 }
 0x1a8   : > { %s932_s27 = sshra.s32 %s682_s26, 4  ;;  %s933_s27 = int_to_ptr.hbm [resolvable:$true] %s932_s27 }
 0x1a9   : > { %s934_s20 = scalar_lea.hbm %s933_s27, 8  ;;  %p939_p12 = scmp.lt.s32.totalorder %s933_s27, %s1370_s6 }
 0x1aa   : > { %p935_p1 = scmp.ne.s32.totalorder %s933_s27, %s934_s20  ;;  %p940_p8 = scmp.lt.s32.totalorder %s938_s7, %s934_s20 }
 0x1ac   : > { %p936_p3 = pnand %p935_p1, %p1097_p13  ;;  %p941_p7 = por %p940_p8, %p939_p12 }
 0x1ae   : > { %p937_p5 = pneg %p936_p3 }
 0x1b0   : > { %p942_p9 = pnand %p941_p7, %p937_p5 }
 0x1d8   : > { %v544_v37 = vpop.permute.xlu2 %543 }
 0x1e0   : > { %v552_v38 = vpop.permute.xlu2 %551 }
 0x1e8   : > { %v538_v41 = vpop.permute.xlu2 %537 }
 0x1ef   : > { %v546_v39 = vpop.permute.xlu0 %545  ;;  %v550_v40 = vpop.permute.xlu1 %549 }
 0x1f0   : > { %v553_v42 = vsel %vm399_vm3, %v550_v40, %v552_v38  ;;  %v554_v43 = vsel %vm399_vm3, %v552_v38, %v550_v40  ;;  %v528_v52 = vpop.permute.xlu2 %527  ;;  %v548_v55 = vsel %vm387_vm0, %v546_v39, %v544_v37  ;;  %v654_v38 = vld.sshfl [vmem:[#allocation1 + $0x8] sm:$0xff pattern:$0x75316420] }
 0x1f1   : > { %v595_v46 = vmul.f32 %v553_v42, %v1177_v44  ;;  %v596_v47 = vmul.f32 %v554_v43, %v1179_v45  ;;  %v547_v45 = vsel %vm387_vm0, %v544_v37, %v546_v39  ;;  %v576_v61 = vrot.slane %v548_v55, 4  ;;  %v653_v39 = vld.sshfl [vmem:[#allocation1] sm:$0xff pattern:$0x75316420] }
 0x1f2   : > { %v575_v60 = vrot.slane %v547_v45, 4 }
 0x1f3   : > { %777 = vmatpush.msk.msra.mxu2 %vm431_vm4, %v595_v46  ;;  %779 = vmatpush.msk.msra.mxu3 %vm431_vm4, %v596_v47 }
 0x1f7   : > { %v532_v48 = vpop.permute.xlu0 %531  ;;  %v534_v49 = vpop.permute.xlu1 %533 }
 0x1f8   : > { %v535_v54 = vsel %vm363_vm1, %v532_v48, %v534_v49  ;;  %v536_v44 = vsel %vm363_vm1, %v534_v49, %v532_v48  ;;  %v520_v8 = vpop.permute.xlu2 %519 }
 0x1f9   : > { %v569_v56 = vrot.slane %v535_v54, 4  ;;  %v570_v58 = vrot.slane %v536_v44, 4 }
 0x1fb   : > { %v583_v4 = vsel %vm431_vm4, %v505_v35, %v569_v56  ;;  %v584_v5 = vsel %vm431_vm4, %v506_v36, %v570_v58  ;;  %v299_v36 = vld [vmem:[%s1367_s3] sm:$0xf] }
 0x1fc   : > { %v591_v9 = vmul.f32 %v583_v4, %v1199_v57  ;;  %v592_v10 = vmul.f32 %v584_v5, %v1202_v59 }
 0x1ff   : > { %v540_v62 = vpop.permute.xlu0 %539  ;;  %v526_v63 = vpop.permute.xlu1 %525 }
 0x200   : > { %v541_v0 = vsel %vm375_vm2, %v538_v41, %v540_v62  ;;  %v542_v1 = vsel %vm375_vm2, %v540_v62, %v538_v41  ;;  %v529_v13 = vsel %vm351_vm6, %v526_v63, %v528_v52  ;;  %v530_v16 = vsel %vm351_vm6, %v528_v52, %v526_v63  ;;  %v510_v17 = vpop.permute.xlu2 %509 }
 0x201   : > { %v585_v2 = vsel %vm431_vm4, %v541_v0, %v575_v60  ;;  %v586_v3 = vsel %vm431_vm4, %v542_v1, %v576_v61  ;;  %v563_v57 = vrot.slane %v530_v16, 4  ;;  %v564_v19 = vrot.slane %v529_v13, 4 }
 0x202   : > { %v593_v6 = vmul.f32 %v585_v2, %v1189_v51  ;;  %v594_v7 = vmul.f32 %v586_v3, %v1192_v53 }
 0x204   : > { %623 = vmatpush.msra.mxu2 %v593_v6  ;;  %643 = vmatpush.msra.mxu3 %v594_v7 }
 0x206   : > { %624 = vmatpush.msra.mxu2 %v591_v9  ;;  %644 = vmatpush.msra.mxu3 %v592_v10 }
 0x207   : > { %v514_v11 = vpop.permute.xlu0 %513  ;;  %v516_v12 = vpop.permute.xlu1 %515 }
 0x208   : > { %v517_v51 = vsel %vm327_vm5, %v514_v11, %v516_v12  ;;  %v518_v53 = vsel %vm327_vm5, %v516_v12, %v514_v11 }
 0x209   : > { %v557_v59 = vrot.slane %v518_v53, 4  ;;  %v558_v20 = vrot.slane %v517_v51, 4 }
 0x20f   : > { %v522_v22 = vpop.permute.xlu0 %521  ;;  %v508_v24 = vpop.permute.xlu1 %507 }
 0x210   : > { %v523_v25 = vsel %vm339_vm8, %v520_v8, %v522_v22  ;;  %v524_v26 = vsel %vm339_vm8, %v522_v22, %v520_v8  ;;  %v511_v18 = vsel %vm315_vm7, %v508_v24, %v510_v17  ;;  %v512_v27 = vsel %vm315_vm7, %v510_v17, %v508_v24 }
 0x211   : > { %v581_v28 = vsel %vm431_vm4, %v524_v26, %v563_v57  ;;  %v582_v29 = vsel %vm431_vm4, %v523_v25, %v564_v19  ;;  %v579_v30 = vsel %vm431_vm4, %v512_v27, %v557_v59  ;;  %v580_v31 = vsel %vm431_vm4, %v511_v18, %v558_v20 }
 0x212   : > { %v589_v33 = vmul.f32 %v581_v28, %v1225_v14  ;;  %v590_v34 = vmul.f32 %v582_v29, %v1227_v15  ;;  %v587_v35 = vmul.f32 %v579_v30, %v1237_v21  ;;  %v588_v32 = vmul.f32 %v580_v31, %v1240_v23 }
 0x214   : > { %625 = vmatpush.msra.mxu2 %v589_v33  ;;  %645 = vmatpush.msra.mxu3 %v590_v34 }
 0x216   : > { %626 = vmatpush.msra.mxu2 %v587_v35  ;;  %646 = vmatpush.msra.mxu3 %v588_v32 }
 0x217   : > { %778 = vmatmul.msk.f32.vlgmr.msra.gmra.mxu2 %vm455_vm9, %v299_v36  ;;  %780 = vmatmul.msk.f32.vlgmr.msra.gmra.mxu3 %vm455_vm9, %v299_v36  ;;  %v600_v14 = vpop.permute.xlu0 %599 }
 0x29a   : > { %v628_v15 = vpop.f32.mrf.mxu2  ;;  %v648_v37 = vpop.f32.mrf.mxu3 }
 0x29b   : > { %v629_v21 = vadd.f32 %v628_v15, %v600_v14  ;;  %v649_v23 = vadd.f32 %v648_v37, %v600_v14 }
 0x29d   : > { %v658_v40 = vadd.f32 %v654_v38, %v649_v23  ;;  %v657_v41 = vadd.f32 %v653_v39, %v629_v21 }
 0x29f   : > { %v661_v42 = vrot.slane %v658_v40, 4 }
 0x2a1   : > { %v662_v43 = vsel %vm431_vm4, %v657_v41, %v661_v42 }
 0x2a2   : > { %664 = vst [vmem:[%s286_s25] sm:$0xff] %v662_v43 }
 0x2a3   : > { %945 = shalt.err (!%p942_p9)
}
 0x2a4   : > { %794 = dma.vmem_to_hbm [thread:$0]  (%p1097_p13), %s680_s19, 128, %s682_s26, %s666_s28  }
 0x2a5 PF: > { %s693_s17 = sand.u32 1, %s976_s21   ;;  %p1376_p10 = scmp.ge.s32.totalorder %s988_s24, 2 }
 0x2a6   : > { %s694_s8 = scalar_lea.sflag [#allocation4], %s693_s17 }
 0x2a7   : > { %p805_p11 = pnand %p1376_p10, %p1102_p4 }
 0x2a9   : > { %p806_p0 = pneg %p805_p11 }
 0x2ab   : > { %971 = dma.done.wait (%p806_p0), %s694_s8, 128  }
 0x2ac   : > { %973 = vsyncadd (%p806_p0), %s694_s8, 4294967168  ;;  %p20_p2 = scmp.ge.s32.totalorder %s1077_s11, 4   ;;  %s1377_s21 = smov %s980_s22 }
 0x2ad   : > { %s1378_s22 = smov %s984_s23  ;;  %s1379_s23 = smov %s1089_s14 }
 0x2ae   : > { %s1380_s24 = smov %s1077_s11  ;;  %22 = sbr.rel (!%p20_p2) target bundleno = 6 (0x6), region = 93 }
 0x2b3   :  { %700 = vsyncpa [#allocation3], 1 }
 0x2b4   :  { %702 = vsyncpa [#allocation3 + $0x1], 1 }
 0x2b5   :  { %703 = vsyncpa [#allocation6], 1 }
 0x2b6   :  { %704 = vsyncpa [#allocation4], 1 }
 0x2b7   :  { %706 = vsyncpa [#allocation4 + $0x1], 1 }

</bundles_post_ra>
